<compile_context>
chip_gen: v5e
topology: v5e:2x2
jax: 0.10.0
libtpu: 0.0.40
codegen_flags: <defaults>
</compile_context>

<pallas_src>
import jax
import jax.numpy as jnp
from jax.experimental import pallas as pl
from jax.experimental.pallas import tpu as pltpu


def _make_mlp_kernel(n_layers, compute_dtype):
    """MLP kernel: (matmul + bias + ReLU) x (n_layers-1), final layer no ReLU."""

    def kernel(*refs):
        # refs = [x, (W_0, b_0), ..., (W_{n_layers-1}, b_{n_layers-1}), q_out]
        x_ref = refs[0]
        q_ref = refs[-1]
        # Narrow activations to the MXU-input dtype inside the kernel (the
        # wrapper never makes an extra HBM pass over x).
        h = x_ref[...].astype(compute_dtype)
        idx = 1
        for layer in range(n_layers):
            w = refs[idx][...]                 # compute_dtype, VMEM-resident
            b = refs[idx + 1][...]
            idx += 2
            # MXU matmul with f32 accumulation.
            z = jnp.dot(h, w, preferred_element_type=jnp.float32)
            if layer < n_layers - 1:
                # Bias-add + ReLU in the compute dtype (bf16 halves the vreg /
                # VMEM footprint of intermediates on v6e/v7x).
                h = jnp.maximum(z.astype(compute_dtype) + b, 0)
            else:
                q_ref[...] = (z + b).astype(q_ref.dtype)

    return kernel


def _choose_batch_tile(B, align, block_b):
    """Single step for small/medium B; else large aligned tiles, preferring an
    even step count so the 'parallel' axis can shard over v7x's 2 TensorCores."""
    if B <= block_b:
        return B                                   # one grid step, full batch
    tb = max(align, (min(block_b, B) // align) * align)
    steps = -(-B // tb)
    if steps > 1 and steps % 2 == 1:
        cand = -(-B // (steps + 1))
        cand = max(align, -(-cand // align) * align)
        if (-(-B // cand)) % 2 == 0:
            tb = cand
    return tb


def dueling_dqn_forward(x, hidden_params, v_params, a_params, *,
                        block_b=2048, compute_dtype=jnp.bfloat16):
    """Dueling-DQN forward in one Pallas kernel.

    x:             [B, input_dim]  float32 (NOT pre-cast: cast happens in-kernel)
    hidden_params: list of (W [in,out], b [1,out])   (transposed vs torch)
    v_params:      (Wv [H,1],  bv [1,1])
    a_params:      (Wa [H,K],  ba [1,K])
    returns q:     [B, K] float32
    """
    B, d_in = x.shape

    # --- Fold the dueling head into a single fused linear layer (exact). ---
    wv, bv = v_params
    wa, ba = a_params
    wq = wa + wv - jnp.mean(wa, axis=1, keepdims=True)     # [H, K]
    bq = ba + bv - jnp.mean(ba, axis=1, keepdims=True)     # [1, K]
    K = wq.shape[1]

    layers = list(hidden_params) + [(wq, bq)]
    n_layers = len(layers)

    # Weights (tiny, VMEM-resident) stored in the compute dtype; hidden biases
    # too (added in compute dtype); final bias stays f32 for the f32 output add.
    weights = [w.astype(compute_dtype) for (w, _) in layers]
    biases = ([b.astype(compute_dtype) for (_, b) in layers[:-1]]
              + [layers[-1][1].astype(jnp.float32)])

    # --- Batch tiling (x stays f32 in HBM; no wrapper cast pass). ---
    align = 8 * (4 // jnp.dtype(compute_dtype).itemsize)   # 8 (f32) / 16 (bf16)
    tb = _choose_batch_tile(B, align, block_b)
    grid = (pl.cdiv(B, tb),)

    flat_args = [x]
    in_specs = [pl.BlockSpec((tb, d_in), lambda i: (i, 0))]
    for w, b in zip(weights, biases):
        flat_args += [w, b]
        # Constant index_map -> weights/biases stay VMEM-resident across grid.
        in_specs.append(pl.BlockSpec(tuple(w.shape), lambda i: (0, 0)))
        in_specs.append(pl.BlockSpec(tuple(b.shape), lambda i: (0, 0)))
    out_spec = pl.BlockSpec((tb, K), lambda i: (i, 0))

    # --- Advisory cost estimate for XLA scheduling. ---
    dims = [d_in] + [w.shape[1] for w in weights]
    flops = sum(2 * B * di * do for di, do in zip(dims[:-1], dims[1:]))
    bytes_accessed = (
        x.size * x.dtype.itemsize
        + sum(a.size * a.dtype.itemsize for a in flat_args[1:])
        + B * K * 4
    )
    cost = pl.CostEstimate(flops=flops, transcendentals=0,
                           bytes_accessed=bytes_accessed)

    kernel = _make_mlp_kernel(n_layers, compute_dtype)
    return pl.pallas_call(
        kernel,
        out_shape=jax.ShapeDtypeStruct((B, K), jnp.float32),
        grid=grid,
        in_specs=in_specs,
        out_specs=out_spec,
        compiler_params=pltpu.CompilerParams(
            dimension_semantics=("parallel",),
            vmem_limit_bytes=32 * 1024 * 1024,   # <= v7x scoped default; tiles are tiny
        ),
        cost_estimate=cost,
    )(*flat_args)


def _torch_linear_init(key, in_dim, out_dim):
    """Deterministic init mimicking torch.nn.Linear default U[-1/sqrt(in), 1/sqrt(in)]."""
    kw, kb = jax.random.split(key)
    bound = 1.0 / jnp.sqrt(jnp.float32(in_dim))
    w = jax.random.uniform(kw, (in_dim, out_dim), jnp.float32, -bound, bound)
    b = jax.random.uniform(kb, (1, out_dim), jnp.float32, -bound, bound)
    return w, b


def _reference_forward(x, hidden_params, v_params, a_params):
    """Pure-JAX f32 reference (unfolded head) for correctness checking."""
    h = x
    for w, b in hidden_params:
        h = jnp.maximum(h @ w + b, 0.0)
    v = h @ v_params[0] + v_params[1]
    a = h @ a_params[0] + a_params[1]
    return v + a - jnp.mean(a, axis=-1, keepdims=True)


if __name__ == "__main__":
    # Small config consistent with the module:
    #   config.input_dim = 32, config.hidden_layers = [64, 32], config.codebook_K = 16
    batch = 8
    input_dim = 32
    hidden_layers = [64, 32]
    codebook_K = 16

    key = jax.random.PRNGKey(0)
    keys = jax.random.split(key, len(hidden_layers) + 4)

    hidden_params = []
    curr = input_dim
    for i, h in enumerate(hidden_layers):
        hidden_params.append(_torch_linear_init(keys[i], curr, h))
        curr = h
    v_params = _torch_linear_init(keys[len(hidden_layers)], curr, 1)
    a_params = _torch_linear_init(keys[len(hidden_layers) + 1], curr, codebook_K)

    # --- Small batch: single grid step. ---
    x = jax.random.normal(keys[-2], (batch, input_dim), jnp.float32)
    q_ref = _reference_forward(x, hidden_params, v_params, a_params)

    # Strict check in f32 (only differs from reference by head-fold
    # associativity and MXU accumulation order).
    q_f32 = jax.block_until_ready(
        dueling_dqn_forward(x, hidden_params, v_params, a_params,
                            compute_dtype=jnp.float32))
    assert q_f32.shape == (batch, codebook_K)
    assert jnp.allclose(q_f32, q_ref, atol=1e-4, rtol=1e-4), "f32 mismatch vs reference"

    # Default (performance) path: bf16 MXU inputs / elementwise, f32 accumulation.
    q = jax.block_until_ready(
        dueling_dqn_forward(x, hidden_params, v_params, a_params,
                            compute_dtype=jnp.bfloat16))
    assert q.shape == (batch, codebook_K)
    assert jnp.allclose(q, q_ref, atol=5e-2, rtol=5e-2), "bf16 mismatch vs reference"

    # --- Larger, non-divisible batch: exercises the multi-step pipelined grid
    #     (even step count) and the padded final tile. ---
    big_batch = 4100
    xb = jax.random.normal(keys[-1], (big_batch, input_dim), jnp.float32)
    qb_ref = _reference_forward(xb, hidden_params, v_params, a_params)

    qb_f32 = jax.block_until_ready(
        dueling_dqn_forward(xb, hidden_params, v_params, a_params,
                            block_b=1024, compute_dtype=jnp.float32))
    assert qb_f32.shape == (big_batch, codebook_K)
    assert jnp.allclose(qb_f32, qb_ref, atol=1e-4, rtol=1e-4), "tiled f32 mismatch"

    qb = jax.block_until_ready(
        dueling_dqn_forward(xb, hidden_params, v_params, a_params,
                            block_b=1024, compute_dtype=jnp.bfloat16))
    assert qb.shape == (big_batch, codebook_K)
    assert jnp.allclose(qb, qb_ref, atol=1e-1, rtol=1e-1), "tiled bf16 mismatch"

    print("KERNEL_OK")
</pallas_src>

<mosaic_0001>
module attributes {stable_mosaic.version = 11 : i64} {
  func.func @kernel(%arg0: i32, %arg1: memref<8x32xf32, #tpu.memory_space<vmem>>, %arg2: memref<32x64xf32, #tpu.memory_space<vmem>>, %arg3: memref<1x64xf32, #tpu.memory_space<vmem>>, %arg4: memref<64x32xf32, #tpu.memory_space<vmem>>, %arg5: memref<1x32xf32, #tpu.memory_space<vmem>>, %arg6: memref<32x16xf32, #tpu.memory_space<vmem>>, %arg7: memref<1x16xf32, #tpu.memory_space<vmem>>, %arg8: memref<8x16xf32, #tpu.memory_space<vmem>>) attributes {dimension_semantics = [#tpu.dimension_semantics<parallel>], iteration_bounds = array<i64: 1>, scalar_prefetch = 0 : i64, scratch_operands = 0 : i64, tpu.core_type = #tpu.core_type<tc>, window_params = [{transform_indices = @transform_0, window_bounds = array<i64: 8, 32>}, {pipeline_mode = #tpu.pipeline_mode<synchronous>, transform_indices = @transform_1, window_bounds = array<i64: 32, 64>}, {pipeline_mode = #tpu.pipeline_mode<synchronous>, transform_indices = @transform_2, window_bounds = array<i64: 1, 64>}, {pipeline_mode = #tpu.pipeline_mode<synchronous>, transform_indices = @transform_3, window_bounds = array<i64: 64, 32>}, {pipeline_mode = #tpu.pipeline_mode<synchronous>, transform_indices = @transform_4, window_bounds = array<i64: 1, 32>}, {pipeline_mode = #tpu.pipeline_mode<synchronous>, transform_indices = @transform_5, window_bounds = array<i64: 32, 16>}, {pipeline_mode = #tpu.pipeline_mode<synchronous>, transform_indices = @transform_6, window_bounds = array<i64: 1, 16>}, {transform_indices = @transform_7, window_bounds = array<i64: 8, 16>}]} {
    %c0 = arith.constant 0 : index
    %c0_0 = arith.constant 0 : index
    %0 = vector.load %arg1[%c0, %c0_0] : memref<8x32xf32, #tpu.memory_space<vmem>>, vector<8x32xf32>
    %c0_1 = arith.constant 0 : index
    %c0_2 = arith.constant 0 : index
    %1 = vector.load %arg2[%c0_1, %c0_2] : memref<32x64xf32, #tpu.memory_space<vmem>>, vector<32x64xf32>
    %c0_3 = arith.constant 0 : index
    %c0_4 = arith.constant 0 : index
    %2 = vector.load %arg3[%c0_3, %c0_4] : memref<1x64xf32, #tpu.memory_space<vmem>>, vector<1x64xf32>
    %cst = arith.constant dense<0.000000e+00> : vector<8x64xf32>
    %3 = tpu.matmul %0, %1, %cst {dimension_numbers = #tpu.dot_dimension_numbers<[1], [0], [0], [1], [0, 0, 1, 1], [], []>} : vector<8x32xf32>, vector<32x64xf32>, vector<8x64xf32> -> vector<8x64xf32>
    %4 = vector.broadcast %2 : vector<1x64xf32> to vector<8x64xf32>
    %5 = arith.addf %3, %4 : vector<8x64xf32>
    %cst_5 = arith.constant 0.000000e+00 : f32
    %6 = vector.broadcast %cst_5 : f32 to vector<8x64xf32>
    %7 = arith.maximumf %5, %6 : vector<8x64xf32>
    %c0_6 = arith.constant 0 : index
    %c0_7 = arith.constant 0 : index
    %8 = vector.load %arg4[%c0_6, %c0_7] : memref<64x32xf32, #tpu.memory_space<vmem>>, vector<64x32xf32>
    %c0_8 = arith.constant 0 : index
    %c0_9 = arith.constant 0 : index
    %9 = vector.load %arg5[%c0_8, %c0_9] : memref<1x32xf32, #tpu.memory_space<vmem>>, vector<1x32xf32>
    %cst_10 = arith.constant dense<0.000000e+00> : vector<8x32xf32>
    %10 = tpu.matmul %7, %8, %cst_10 {dimension_numbers = #tpu.dot_dimension_numbers<[1], [0], [0], [1], [0, 0, 1, 1], [], []>} : vector<8x64xf32>, vector<64x32xf32>, vector<8x32xf32> -> vector<8x32xf32>
    %11 = vector.broadcast %9 : vector<1x32xf32> to vector<8x32xf32>
    %12 = arith.addf %10, %11 : vector<8x32xf32>
    %cst_11 = arith.constant 0.000000e+00 : f32
    %13 = vector.broadcast %cst_11 : f32 to vector<8x32xf32>
    %14 = arith.maximumf %12, %13 : vector<8x32xf32>
    %c0_12 = arith.constant 0 : index
    %c0_13 = arith.constant 0 : index
    %15 = vector.load %arg6[%c0_12, %c0_13] : memref<32x16xf32, #tpu.memory_space<vmem>>, vector<32x16xf32>
    %c0_14 = arith.constant 0 : index
    %c0_15 = arith.constant 0 : index
    %16 = vector.load %arg7[%c0_14, %c0_15] : memref<1x16xf32, #tpu.memory_space<vmem>>, vector<1x16xf32>
    %cst_16 = arith.constant dense<0.000000e+00> : vector<8x16xf32>
    %17 = tpu.matmul %14, %15, %cst_16 {dimension_numbers = #tpu.dot_dimension_numbers<[1], [0], [0], [1], [0, 0, 1, 1], [], []>} : vector<8x32xf32>, vector<32x16xf32>, vector<8x16xf32> -> vector<8x16xf32>
    %18 = vector.broadcast %16 : vector<1x16xf32> to vector<8x16xf32>
    %19 = arith.addf %17, %18 : vector<8x16xf32>
    %c0_17 = arith.constant 0 : index
    %c0_18 = arith.constant 0 : index
    %20 = vector.load %arg8[%c0_17, %c0_18] : memref<8x16xf32, #tpu.memory_space<vmem>>, vector<8x16xf32>
    tpu.vector_store %arg8[%c0_17, %c0_18], %19 {strides = array<i32>} : memref<8x16xf32, #tpu.memory_space<vmem>>, vector<8x16xf32>,
    return
  }
  func.func @transform_0(%arg0: i32) -> (i32, i32) {
    %c0_i32 = arith.constant 0 : i32
    %c0_i32_0 = arith.constant 0 : i32
    return %arg0, %c0_i32 : i32, i32
  }
  func.func @transform_1(%arg0: i32) -> (i32, i32) {
    %c0_i32 = arith.constant 0 : i32
    %c0_i32_0 = arith.constant 0 : i32
    %c0_i32_1 = arith.constant 0 : i32
    return %c0_i32, %c0_i32_0 : i32, i32
  }
  func.func @transform_2(%arg0: i32) -> (i32, i32) {
    %c0_i32 = arith.constant 0 : i32
    %c0_i32_0 = arith.constant 0 : i32
    %c0_i32_1 = arith.constant 0 : i32
    return %c0_i32, %c0_i32_0 : i32, i32
  }
  func.func @transform_3(%arg0: i32) -> (i32, i32) {
    %c0_i32 = arith.constant 0 : i32
    %c0_i32_0 = arith.constant 0 : i32
    %c0_i32_1 = arith.constant 0 : i32
    return %c0_i32, %c0_i32_0 : i32, i32
  }
  func.func @transform_4(%arg0: i32) -> (i32, i32) {
    %c0_i32 = arith.constant 0 : i32
    %c0_i32_0 = arith.constant 0 : i32
    %c0_i32_1 = arith.constant 0 : i32
    return %c0_i32, %c0_i32_0 : i32, i32
  }
  func.func @transform_5(%arg0: i32) -> (i32, i32) {
    %c0_i32 = arith.constant 0 : i32
    %c0_i32_0 = arith.constant 0 : i32
    %c0_i32_1 = arith.constant 0 : i32
    return %c0_i32, %c0_i32_0 : i32, i32
  }
  func.func @transform_6(%arg0: i32) -> (i32, i32) {
    %c0_i32 = arith.constant 0 : i32
    %c0_i32_0 = arith.constant 0 : i32
    %c0_i32_1 = arith.constant 0 : i32
    return %c0_i32, %c0_i32_0 : i32, i32
  }
  func.func @transform_7(%arg0: i32) -> (i32, i32) {
    %c0_i32 = arith.constant 0 : i32
    %c0_i32_0 = arith.constant 0 : i32
    return %arg0, %c0_i32 : i32, i32
  }
}

</mosaic_0001>

<bundles_post_ra>
// kernel: tpu_custom_call.1
= control target key start
LH: loop header
LB: loop body
LE: loop exit
PB: predicated region body
PF: predicated region fallthrough
CT: control target
= control target key end

     0   :  { %s286_s0 = inlined_call_operand.vmem [shape: f32[8,32], index: 0, kind: input, shape index: {}]   ;;  %s287_s1 = inlined_call_operand.vmem [shape: f32[32,64], index: 1, kind: input, shape index: {}]   ;;  %s288_s2 = inlined_call_operand.vmem [shape: f32[1,64], index: 2, kind: input, shape index: {}]   ;;  %s289_s3 = inlined_call_operand.vmem [shape: f32[64,32], index: 3, kind: input, shape index: {}]   ;;  %s290_s4 = inlined_call_operand.vmem [shape: f32[1,32], index: 4, kind: input, shape index: {}]   ;;  %s291_s5 = inlined_call_operand.vmem [shape: f32[32,16], index: 5, kind: input, shape index: {}]   ;;  %s292_s6 = inlined_call_operand.vmem [shape: f32[1,16], index: 6, kind: input, shape index: {}]   ;;  %s293_s7 = inlined_call_operand.hbm [shape: f32[8,16], index: 7, kind: output, shape index: {}]  }
   0x1   :  { %v31_v0 = vld [vmem:[%s287_s1 + $0x18] sm:$0xff]  ;;  %v30_v1 = vld [vmem:[%s287_s1 + $0x10] sm:$0xff]  ;;  %v29_v3 = vld [vmem:[%s287_s1 + $0x8] sm:$0xff] }
   0x2   :  { %52 = vmatpush.msra.mxu0 %v31_v0  ;;  %v68_v2 = vld [vmem:[%s289_s3 + $0x38] sm:$0xff]  ;;  %v67_v4 = vld [vmem:[%s289_s3 + $0x30] sm:$0xff]  ;;  %v28_v5 = vld [vmem:[%s287_s1] sm:$0xff] }
   0x3   :  { %85 = vmatpush.msra.mxu1 %v68_v2  ;;  %v66_v6 = vld [vmem:[%s289_s3 + $0x28] sm:$0xff] }
   0x4   :  { %53 = vmatpush.msra.mxu0 %v30_v1 }
   0x5   :  { %86 = vmatpush.msra.mxu1 %v67_v4 }
   0x6   :  { %12 = vsyncpa [#allocation3], 0  ;;  %54 = vmatpush.msra.mxu0 %v29_v3  ;;  %v27_v7 = vld [vmem:[%s286_s0] sm:$0xff]  ;;  %vm36_vm0 = vcmask 261120   ;;  %v64_v9 = vld [vmem:[%s289_s3 + $0x18] sm:$0xff]  ;;  %vm73_vm1 = vcmask 523264  }
   0x7   :  { %v65_v8 = vld [vmem:[%s289_s3 + $0x20] sm:$0xff]  ;;  %87 = vmatpush.msra.mxu1 %v66_v6  ;;  %v63_v10 = vld [vmem:[%s289_s3 + $0x10] sm:$0xff]  ;;  %v62_v11 = vld [vmem:[%s289_s3 + $0x8] sm:$0xff]  ;;  %s180_s14 = smov [#allocation2]   ;;  %vm129_vm2 = vcmask 130048  }
   0x8   :  { %55 = vmatpush.msra.mxu0 %v28_v5  ;;  %v61_v12 = vld [vmem:[%s289_s3] sm:$0xff]  ;;  %v101_v13 = vld [vmem:[%s291_s5 + $0x18] sm:$0xff]  ;;  %v100_v18 = vld [vmem:[%s291_s5 + $0x10] sm:$0xff]  ;;  %s136_s15 = sshll.u32 %s180_s14, 4  ;;  %s137_s15 = int_to_ptr.vmem [resolvable:$true] %s136_s15 }
   0x9   :  { %147 = vmatmul.msk.f32.vlgmr.msra.gmra.mxu0 %vm36_vm0, %v27_v7  ;;  %88 = vmatpush.msra.mxu1 %v65_v8  ;;  %v151_v14 = vld [vmem:[%s288_s2] ss:$0 sm:$0xff]  ;;  %v99_v19 = vld [vmem:[%s291_s5 + $0x8] sm:$0xff] }
   0xa   :  { %121 = vmatpush.msra.mxu2 %v101_v13  ;;  %v98_v20 = vld [vmem:[%s291_s5] sm:$0xff]  ;;  %s138_s5 = sshll.u32 %s293_s7, 4  ;;  %s139_s5 = int_to_ptr.hbm [resolvable:$true] %s138_s5 }
   0xb   :  { %89 = vmatpush.msra.mxu1 %v64_v9  ;;  %v152_v21 = vld [vmem:[%s290_s4] ss:$0 sm:$0xff] }
   0xc   :  { %122 = vmatpush.msra.mxu2 %v100_v18  ;;  %v153_v25 = vld [vmem:[%s292_s6] ss:$0 sm:$0xff] }
   0xd   :  { %90 = vmatpush.msra.mxu1 %v63_v10 }
   0xe   :  { %123 = vmatpush.msra.mxu2 %v99_v19 }
   0xf   :  { %91 = vmatpush.msra.mxu1 %v62_v11 }
  0x10   :  { %124 = vmatpush.msra.mxu2 %v98_v20 }
  0x11   :  { %92 = vmatpush.msra.mxu1 %v61_v12 }
  0x86   :  { %v57_v15 = vpop.f32.mrf.mxu0 }
  0x87   :  { %v58_v16 = vadd.f32 %v151_v14, %v57_v15 }
  0x89   :  { %v60_v17 = vmax.f32 %v58_v16, 0.0 }
  0x8b   :  { %148 = vmatmul.msk.f32.vlgmr.msra.gmra.mxu1 %vm73_vm1, %v60_v17 }
 0x108   :  { %v94_v22 = vpop.f32.mrf.mxu1 }
 0x109   :  { %v95_v23 = vadd.f32 %v152_v21, %v94_v22 }
 0x10b   :  { %v97_v24 = vmax.f32 %v95_v23, 0.0 }
 0x10d   :  { %149 = vmatmul.msk.f32.vlgmr.msra.gmra.mxu2 %vm36_vm0, %v97_v24 }
 0x190   :  { %v126_v26 = vpop.f32.mrf.mxu2 }
 0x191   :  { %v127_v27 = vadd.f32 %v153_v25, %v126_v26 }
 0x193   :  { %130 = vst.msk [vmem:[#allocation2] sm:$0xff] %vm129_vm2, %v127_v27 }
 0x194   :  { %141 = dma.vmem_to_hbm [thread:$0]  %s137_s15, 128, %s139_s5, [#allocation3]  }
 0x195   :  { %178 = dma.done.wait [#allocation3], 128  }
 0x196   :  { %179 = vsyncadd [#allocation3], 4294967168 }
 0x197   :  { %146 = vsyncpa [#allocation3], 1 }

</bundles_post_ra>
